<compile_context>
chip_gen: v6e
topology: v6e:2x2x1
jax: 0.10.0
libtpu: 0.0.40
codegen_flags: <defaults>
</compile_context>

<pallas_src>
import functools

import jax
import jax.numpy as jnp
from jax.experimental import pallas as pl
from jax.experimental.pallas import tpu as pltpu


def _pos_add_kernel(x_ref, pos_ref, o_ref):
    # x_ref: (bt, lt) tile of the flattened input
    # pos_ref: (1, lt) tile of the flattened positional encoding,
    #          broadcast across the sublane (batch) axis by the VPU.
    o_ref[...] = x_ref[...] + pos_ref[...]


def _choose_tiles(B, ND, itemsize, target_block_bytes, max_lane_tile):
    """Pick (batch_tile, lane_tile) satisfying TPU (8, 128) block constraints."""
    # Lane tile over the flattened num_patches*embed_dim axis: must be a
    # multiple of 128, or equal to the full extent.
    if ND % 128 == 0:
        lt = min(ND, max_lane_tile)
        lt = max(128, (lt // 128) * 128)
    else:
        lt = ND  # full-extent fallback (always legal)

    # Sublane (batch) tile: multiple of the dtype packing granule, or the full
    # extent.  Size it so the x block is ~target_block_bytes.
    sub = 8 * max(1, 4 // max(1, itemsize))  # 8 (f32), 16 (bf16), 32 (i8/fp8)
    rows = max(1, target_block_bytes // max(1, lt * itemsize))
    if rows >= B or B <= sub:
        bt = B
    else:
        bt = min(B, max(sub, (rows // sub) * sub))
    return bt, lt


@functools.partial(jax.jit, static_argnames=("target_block_bytes", "max_lane_tile"))
def trainable_positional_encoding(x, pos, *, target_block_bytes=4 << 20,
                                  max_lane_tile=32768):
    """x: (B, N, D), pos: (1, N, D) -> (B, N, D) = x + pos (broadcast over B)."""
    B, N, D = x.shape
    assert pos.shape == (1, N, D)

    # Add happens in x's dtype (mixed-precision choice: output matches x).
    pos = pos.astype(x.dtype)

    # Flatten to 2D: elementwise add is layout-agnostic; this makes the lane
    # axis large and 128-dense instead of only D-wide.
    ND = N * D
    x2 = x.reshape(B, ND)
    pos2 = pos.reshape(1, ND)

    itemsize = jnp.dtype(x.dtype).itemsize
    bt, lt = _choose_tiles(B, ND, itemsize, target_block_bytes, max_lane_tile)

    # Batch axis innermost (fastest): pos block index constant across it, so
    # its DMA is skipped on consecutive steps.
    grid = (pl.cdiv(ND, lt), pl.cdiv(B, bt))

    out2 = pl.pallas_call(
        _pos_add_kernel,
        out_shape=jax.ShapeDtypeStruct((B, ND), x.dtype),
        grid_spec=pltpu.PrefetchScalarGridSpec(
            num_scalar_prefetch=0,
            grid=grid,
            in_specs=[
                pl.BlockSpec((bt, lt), lambda l, b: (b, l)),
                pl.BlockSpec((1, lt), lambda l, b: (0, l)),
            ],
            out_specs=pl.BlockSpec((bt, lt), lambda l, b: (b, l)),
        ),
        compiler_params=pltpu.CompilerParams(
            # Every output block is written exactly once -> both axes parallel.
            dimension_semantics=("parallel", "parallel"),
            # Headroom for double-buffered ~4 MiB x/out tiles; still well
            # within v7x's 64 MiB physical VMEM.
            vmem_limit_bytes=48 << 20,
        ),
    )(x2, pos2)

    return out2.reshape(B, N, D)


if __name__ == "__main__":
    # Shapes consistent with the module: batch=2, num_patches=8, embed_dim=32.
    B, num_patches, embed_dim = 2, 8, 32

    key = jax.random.PRNGKey(0)
    kx, kp = jax.random.split(key)

    # Deterministic "parameter" init (torch.randn equivalent) and input.
    pos_encoding = jax.random.normal(kp, (1, num_patches, embed_dim), dtype=jnp.float32)
    x = jax.random.normal(kx, (B, num_patches, embed_dim), dtype=jnp.float32)

    out = trainable_positional_encoding(x, pos_encoding)
    out = jax.block_until_ready(out)

    ref = x + pos_encoding
    assert out.shape == (B, num_patches, embed_dim)
    assert jnp.allclose(out, ref, atol=1e-6), "mismatch vs reference"

    # Secondary check: force a small block budget so BOTH grid axes actually
    # tile (batch tiles of 8, lane tiles of 256) and verify the multi-block /
    # broadcast-across-steps path.
    B2, N2, D2 = 32, 8, 128
    kx2, kp2 = jax.random.split(jax.random.PRNGKey(1))
    pos2 = jax.random.normal(kp2, (1, N2, D2), dtype=jnp.float32)
    x2 = jax.random.normal(kx2, (B2, N2, D2), dtype=jnp.float32)
    out2 = jax.block_until_ready(
        trainable_positional_encoding(
            x2, pos2, target_block_bytes=8 * 1024, max_lane_tile=256))
    assert jnp.allclose(out2, x2 + pos2, atol=1e-6), "mismatch (tiled path)"

    # Third check: flattened size NOT a multiple of 128 (full-extent lane
    # block fallback), plus a bf16 mixed-precision case.
    B3, N3, D3 = 2, 8, 24
    kx3, kp3 = jax.random.split(jax.random.PRNGKey(2))
    pos3 = jax.random.normal(kp3, (1, N3, D3), dtype=jnp.float32)
    x3 = jax.random.normal(kx3, (B3, N3, D3), dtype=jnp.float32)
    out3 = jax.block_until_ready(trainable_positional_encoding(x3, pos3))
    assert jnp.allclose(out3, x3 + pos3, atol=1e-6), "mismatch (non-128 path)"

    x4 = x.astype(jnp.bfloat16)
    out4 = jax.block_until_ready(trainable_positional_encoding(x4, pos_encoding))
    assert out4.dtype == jnp.bfloat16
    assert jnp.allclose(out4.astype(jnp.float32),
                        (x4 + pos_encoding.astype(jnp.bfloat16)).astype(jnp.float32),
                        atol=1e-2), "mismatch (bf16 path)"

    print("KERNEL_OK")
</pallas_src>

<mosaic_0001>
module attributes {stable_mosaic.version = 11 : i64} {
  func.func @_pos_add_kernel(%arg0: i32, %arg1: i32, %arg2: memref<2x256xf32, #tpu.memory_space<vmem>>, %arg3: memref<1x256xf32, #tpu.memory_space<vmem>>, %arg4: memref<2x256xf32, #tpu.memory_space<vmem>>) attributes {dimension_semantics = [#tpu.dimension_semantics<parallel>, #tpu.dimension_semantics<parallel>], iteration_bounds = array<i64: 1, 1>, scalar_prefetch = 0 : i64, scratch_operands = 0 : i64, tpu.core_type = #tpu.core_type<tc>, window_params = [{transform_indices = @transform_0, window_bounds = array<i64: 2, 256>}, {transform_indices = @transform_1, window_bounds = array<i64: 1, 256>}, {transform_indices = @transform_2, window_bounds = array<i64: 2, 256>}]} {
    %c0 = arith.constant 0 : index
    %c0_0 = arith.constant 0 : index
    %0 = vector.load %arg2[%c0, %c0_0] : memref<2x256xf32, #tpu.memory_space<vmem>>, vector<2x256xf32>
    %c0_1 = arith.constant 0 : index
    %c0_2 = arith.constant 0 : index
    %1 = vector.load %arg3[%c0_1, %c0_2] : memref<1x256xf32, #tpu.memory_space<vmem>>, vector<1x256xf32>
    %2 = vector.broadcast %1 : vector<1x256xf32> to vector<2x256xf32>
    %3 = arith.addf %0, %2 : vector<2x256xf32>
    %c0_3 = arith.constant 0 : index
    %c0_4 = arith.constant 0 : index
    %4 = vector.load %arg4[%c0_3, %c0_4] : memref<2x256xf32, #tpu.memory_space<vmem>>, vector<2x256xf32>
    tpu.vector_store %arg4[%c0_3, %c0_4], %3 {strides = array<i32>} : memref<2x256xf32, #tpu.memory_space<vmem>>, vector<2x256xf32>,
    return
  }
  func.func @transform_0(%arg0: i32, %arg1: i32) -> (i32, i32) {
    %c0_i32 = arith.constant 0 : i32
    return %arg1, %arg0 : i32, i32
  }
  func.func @transform_1(%arg0: i32, %arg1: i32) -> (i32, i32) {
    %c0_i32 = arith.constant 0 : i32
    %c0_i32_0 = arith.constant 0 : i32
    return %c0_i32, %arg0 : i32, i32
  }
  func.func @transform_2(%arg0: i32, %arg1: i32) -> (i32, i32) {
    %c0_i32 = arith.constant 0 : i32
    return %arg1, %arg0 : i32, i32
  }
}

</mosaic_0001>

<bundles_post_ra>
// kernel: trainable_positional_encoding.1
= control target key start
LH: loop header
LB: loop body
LE: loop exit
PB: predicated region body
PF: predicated region fallthrough
CT: control target
= control target key end

     0   :  { %v14_v0 = vlaneseq  ;;  %v38_v1 = vmov 1983009808   ;;  %s63_s1 = inlined_call_operand.vmem [shape: f32[1,256], index: 1, kind: input, shape index: {}]   ;;  %s64_s0 = inlined_call_operand.vmem [shape: f32[2,256], index: 0, kind: input, shape index: {}]   ;;  %s65_s2 = inlined_call_operand.vmem [shape: f32[2,256], index: 2, kind: output, shape index: {}]  }
   0x1   :  { %v24_v2 = vunpack.c.l.s4 %v38_v1  ;;  %v12_v4 = vld [vmem:[%s63_s1] sm:$0x3] }
   0x2   :  { %v15_v3 = vshrl.u32 %v14_v0, 7  ;;  %v11_v12 = vld [vmem:[%s64_s0] sm:$0xf] }
   0x3   :  { %v25_v5 = vunpack.c.0.s8 %v24_v2 }
   0x4   :  { %v16_v6 = vsub.s32 0, %v15_v3  ;;  %v20_v7 = vsub.s32 1, %v15_v3 }
   0x5   :  { %v28_v10 = vsub.s32 %v25_v5, %v15_v3 }
   0x6   :  { %v17_v8 = vrot.slane %v12_v4, %v16_v6  ;;  %v21_v9 = vrot.slane %v12_v4, %v20_v7 }
   0x8   :  { %v22_v11 = vcombine.low %v17_v8, %v21_v9 }
   0xa   :  { %v29_v13 = vrot.slane %v22_v11, %v28_v10 }
   0xc   :  { %v31_v14 = vadd.f32 %v29_v13, %v11_v12 }
   0xe   :  { %32 = vst [vmem:[%s65_s2] sm:$0xf] %v31_v14 }

</bundles_post_ra>
